<compile_context>
chip_gen: v7x
topology: tpu7x:2x2x1
jax: 0.10.0
libtpu: 0.0.40
codegen_flags: <defaults>
</compile_context>

<pallas_src>
import functools

import jax
import jax.numpy as jnp
from jax.experimental import pallas as pl
from jax.experimental.pallas import tpu as pltpu

LANE = 128


# ----------------------------------------------------------------------------
# Forward kernel: conv (3 aligned tap-matmuls) + folded BN/bias + ReLU
#                 + per-batch GAP (sublane reduce) + single classifier matmul.
# ----------------------------------------------------------------------------
def _swa_forward_kernel(x_ref, wc_ref, bc_ref, wf_ref, bf_ref, out_ref,
                        pooled_ref, *, n, w, hw):
    # x_ref     : (N, (H+2)*W, 3*Cin)  width-taps folded onto lanes
    # wc_ref    : (3, 3*Cin, Cout)     per-dy folded conv weight (BN scale folded)
    # bc_ref    : (1, Cout)            folded conv+BN bias
    # wf_ref    : (Cout, 128)          lane-padded classifier weight
    # bf_ref    : (1, 128)             lane-padded classifier bias
    # pooled_ref: (N, Cout)            tiny VMEM scratch for pooled features
    inv_hw = jnp.float32(1.0 / hw)
    for i in range(n):                                    # static unroll, N small
        acc = None
        for dy in range(3):                               # height taps in-kernel
            lhs = x_ref[i, pl.ds(dy * w, hw), :]          # aligned (H*W, 3*Cin) slice
            part = jnp.dot(lhs, wc_ref[dy],
                           preferred_element_type=jnp.float32)
            acc = part if acc is None else acc + part
        act = jnp.maximum(acc + bc_ref[...], 0.0)         # (H*W, Cout), registers only
        # Global average pool for this batch element: sublane row-sum (XLU).
        pooled_ref[pl.ds(i, 1), :] = jnp.sum(act, axis=0, keepdims=True) * inv_hw

    # Single batched classifier matmul, lane-dense (N, 128) store.
    logits = jnp.dot(pooled_ref[...], wf_ref[...],
                     preferred_element_type=jnp.float32) + bf_ref[...]
    out_ref[...] = logits.astype(out_ref.dtype)


def swa_forward(x_nchw, params):
    """Forward pass of SWA == forward pass of the proxy model."""
    conv_w, conv_b, gamma, beta, rmean, rvar, fc_w, fc_b = params
    N, Cin, H, W = x_nchw.shape
    Cout = conv_w.shape[0]
    num_classes = fc_w.shape[1]
    eps = 1e-5
    assert W % 8 == 0, "W must be a multiple of 8 for aligned in-kernel slices"

    # --- layout glue (pure JAX): NCHW -> NHWC, zero-pad, gather width taps ---
    x = jnp.transpose(x_nchw, (0, 2, 3, 1)).astype(jnp.float32)       # (N,H,W,Cin)
    xp = jnp.pad(x, ((0, 0), (1, 1), (1, 1), (0, 0)))                 # (N,H+2,W+2,Cin)
    xcat = jnp.concatenate([xp[:, :, dx:dx + W, :] for dx in range(3)],
                           axis=-1)                                   # (N,H+2,W,3*Cin)
    xcat = xcat.reshape(N, (H + 2) * W, 3 * Cin)

    # --- fold conv bias + BatchNorm(eval) into the conv weight/bias ---
    inv = 1.0 / jnp.sqrt(rvar + eps)
    bns = gamma * inv                                  # BN scale
    bnb = beta - rmean * bns                           # BN shift
    wc = (jnp.transpose(conv_w, (2, 3, 1, 0))          # (dy, dx, cin, cout)
          .reshape(3, 3 * Cin, Cout) * bns[None, None, :]).astype(jnp.float32)
    bc = (conv_b * bns + bnb).reshape(1, Cout).astype(jnp.float32)

    # --- lane-dense classifier: pad num_classes up to a multiple of 128 ---
    ncp = ((num_classes + LANE - 1) // LANE) * LANE
    wf = jnp.pad(fc_w.astype(jnp.float32), ((0, 0), (0, ncp - num_classes)))
    bf = jnp.pad(fc_b.astype(jnp.float32), (0, ncp - num_classes)).reshape(1, ncp)

    out = pl.pallas_call(
        functools.partial(_swa_forward_kernel, n=N, w=W, hw=H * W),
        out_shape=jax.ShapeDtypeStruct((N, ncp), jnp.float32),
        scratch_shapes=[pltpu.VMEM((N, Cout), jnp.float32)],
    )(xcat, wc, bc, wf, bf)
    return out[:, :num_classes]                        # (N, num_classes)


# ----------------------------------------------------------------------------
# SWA update_weight: model <- decay*model + (1-decay)*proxy
# One streamed, tiled, lane-dense EMA kernel over ALL parameters.
# ----------------------------------------------------------------------------
def _swa_ema_kernel(m_ref, p_ref, o_ref, *, decay):
    m = m_ref[...].astype(jnp.float32)                 # f32 accumulation
    p = p_ref[...].astype(jnp.float32)
    o_ref[...] = (decay * m + (1.0 - decay) * p).astype(o_ref.dtype)


def swa_update_params(model_params, proxy_params, decay, block_rows=512):
    leaves_m, treedef = jax.tree_util.tree_flatten(model_params)
    leaves_p = jax.tree_util.tree_leaves(proxy_params)
    sizes = [int(l.size) for l in leaves_m]
    shapes = [l.shape for l in leaves_m]
    dtypes = [l.dtype for l in leaves_m]

    flat_m = jnp.concatenate([l.ravel().astype(jnp.float32) for l in leaves_m])
    flat_p = jnp.concatenate([l.ravel().astype(jnp.float32) for l in leaves_p])
    total = int(flat_m.size)

    # Sublane/lane-dense (rows, 128) layout, rows padded to a block multiple.
    rows = -(-total // LANE)
    rows = ((rows + 7) // 8) * 8
    br = min(block_rows, rows)
    rows = ((rows + br - 1) // br) * br
    pad = rows * LANE - total
    m2 = jnp.pad(flat_m, (0, pad)).reshape(rows, LANE)
    p2 = jnp.pad(flat_p, (0, pad)).reshape(rows, LANE)

    out = pl.pallas_call(
        functools.partial(_swa_ema_kernel, decay=float(decay)),
        out_shape=jax.ShapeDtypeStruct((rows, LANE), jnp.float32),
        grid=(rows // br,),
        in_specs=[pl.BlockSpec((br, LANE), lambda i: (i, 0)),
                  pl.BlockSpec((br, LANE), lambda i: (i, 0))],
        out_specs=pl.BlockSpec((br, LANE), lambda i: (i, 0)),
        input_output_aliases={0: 0},                   # update model in place
        compiler_params=pltpu.CompilerParams(
            dimension_semantics=("parallel",)),        # 2-TC shard on v7x
    )(m2, p2)

    flat_out = out.reshape(-1)[:total]
    new_leaves, off = [], 0
    for s, shp, dt in zip(sizes, shapes, dtypes):
        new_leaves.append(flat_out[off:off + s].reshape(shp).astype(dt))
        off += s
    return jax.tree_util.tree_unflatten(treedef, new_leaves)


def swa_decay(momentum, steps, warmup_steps=0, dynamic_decay=True):
    # Host-side scalar glue mirroring SWA.update_weight's decay schedule.
    factor = 1.0 if steps >= warmup_steps else 0.0
    if dynamic_decay:
        delta = steps - warmup_steps
        decay = min(momentum, (1.0 + delta) / (10.0 + delta)) \
            if (10.0 + delta) != 0 else momentum
    else:
        decay = momentum
    return decay * factor


# TODO(synk): SWA.update_bn only clones BN running stats between modules
# (plain buffer copies) — no compute, so no Pallas kernel is provided for it.


# ----------------------------------------------------------------------------
# Pure-JAX reference (for verification)
# ----------------------------------------------------------------------------
def ref_forward(x_nchw, params):
    conv_w, conv_b, gamma, beta, rmean, rvar, fc_w, fc_b = params
    eps = 1e-5
    y = jax.lax.conv_general_dilated(
        x_nchw, conv_w, (1, 1), "SAME",
        dimension_numbers=("NCHW", "OIHW", "NCHW")) + conv_b[None, :, None, None]
    inv = 1.0 / jnp.sqrt(rvar + eps)
    y = (y - rmean[None, :, None, None]) * (gamma * inv)[None, :, None, None] \
        + beta[None, :, None, None]
    y = jnp.maximum(y, 0.0)
    pooled = y.mean(axis=(2, 3))
    return pooled @ fc_w + fc_b


if __name__ == "__main__":
    N, Cin, H, W = 2, 4, 16, 16
    Cout, num_classes = 8, 10
    momentum = 0.999

    key = jax.random.PRNGKey(0)
    ks = jax.random.split(key, 9)
    conv_w = 0.1 * jax.random.normal(ks[0], (Cout, Cin, 3, 3), jnp.float32)
    conv_b = 0.1 * jax.random.normal(ks[1], (Cout,), jnp.float32)
    gamma = 1.0 + 0.1 * jax.random.normal(ks[2], (Cout,), jnp.float32)
    beta = 0.1 * jax.random.normal(ks[3], (Cout,), jnp.float32)
    rmean = 0.1 * jax.random.normal(ks[4], (Cout,), jnp.float32)
    rvar = jax.random.uniform(ks[5], (Cout,), jnp.float32, 0.5, 1.5)
    fc_w = 0.1 * jax.random.normal(ks[6], (Cout, num_classes), jnp.float32)
    fc_b = 0.1 * jax.random.normal(ks[7], (num_classes,), jnp.float32)

    model_params = (conv_w, conv_b, gamma, beta, rmean, rvar, fc_w, fc_b)
    # proxy = deepcopy(model) at construction time; forward always uses proxy.
    proxy_params = jax.tree_util.tree_map(lambda p: p, model_params)

    x = jax.random.normal(ks[8], (N, Cin, H, W), jnp.float32)

    # --- forward pass through the fused Pallas kernel (uses proxy params) ---
    out = jax.block_until_ready(swa_forward(x, proxy_params))
    ref = ref_forward(x, proxy_params)
    assert out.shape == (N, num_classes)
    assert jnp.allclose(out, ref, atol=1e-4, rtol=1e-4), "forward mismatch"

    # --- SWA update_weight: one batched, tiled EMA over ALL parameters ---
    decay = swa_decay(momentum, steps=5, warmup_steps=0, dynamic_decay=True)
    perturbed_proxy = jax.tree_util.tree_map(lambda p: p + 0.01, model_params)
    blended = jax.block_until_ready(
        swa_update_params(model_params, perturbed_proxy, decay))
    blend_ref = jax.tree_util.tree_map(
        lambda m, p: decay * m + (1.0 - decay) * p, model_params, perturbed_proxy)
    for a, b in zip(jax.tree_util.tree_leaves(blended),
                    jax.tree_util.tree_leaves(blend_ref)):
        assert jnp.allclose(a, b, atol=1e-6), "ema mismatch"

    print("KERNEL_OK")
</pallas_src>

<mosaic_0001>
module attributes {stable_mosaic.version = 11 : i64} {
  func.func @_swa_forward_kernel(%arg0: memref<2x288x12xf32, #tpu.memory_space<vmem>>, %arg1: memref<3x12x8xf32, #tpu.memory_space<vmem>>, %arg2: memref<1x8xf32, #tpu.memory_space<vmem>>, %arg3: memref<8x128xf32, #tpu.memory_space<vmem>>, %arg4: memref<1x128xf32, #tpu.memory_space<vmem>>, %arg5: memref<2x128xf32, #tpu.memory_space<vmem>>, %arg6: memref<2x8xf32, #tpu.memory_space<vmem>>) attributes {dimension_semantics = [], scalar_prefetch = 0 : i64, scratch_operands = 1 : i64, tpu.core_type = #tpu.core_type<tc>} {
    %c0 = arith.constant 0 : index
    %c0_0 = arith.constant 0 : index
    %c0_1 = arith.constant 0 : index
    %0 = vector.load %arg0[%c0, %c0_0, %c0_1] : memref<2x288x12xf32, #tpu.memory_space<vmem>>, vector<1x256x12xf32>
    %1 = vector.shape_cast %0 : vector<1x256x12xf32> to vector<256x12xf32>
    %c0_2 = arith.constant 0 : index
    %c0_3 = arith.constant 0 : index
    %c0_4 = arith.constant 0 : index
    %2 = vector.load %arg1[%c0_2, %c0_3, %c0_4] : memref<3x12x8xf32, #tpu.memory_space<vmem>>, vector<1x12x8xf32>
    %3 = vector.shape_cast %2 : vector<1x12x8xf32> to vector<12x8xf32>
    %cst = arith.constant dense<0.000000e+00> : vector<256x8xf32>
    %4 = tpu.matmul %1, %3, %cst {dimension_numbers = #tpu.dot_dimension_numbers<[1], [0], [0], [1], [0, 0, 1, 1], [], []>} : vector<256x12xf32>, vector<12x8xf32>, vector<256x8xf32> -> vector<256x8xf32>
    %c0_5 = arith.constant 0 : index
    %c16 = arith.constant 16 : index
    %c0_6 = arith.constant 0 : index
    %5 = vector.load %arg0[%c0_5, %c16, %c0_6] : memref<2x288x12xf32, #tpu.memory_space<vmem>>, vector<1x256x12xf32>
    %6 = vector.shape_cast %5 : vector<1x256x12xf32> to vector<256x12xf32>
    %c1 = arith.constant 1 : index
    %c0_7 = arith.constant 0 : index
    %c0_8 = arith.constant 0 : index
    %7 = vector.load %arg1[%c1, %c0_7, %c0_8] : memref<3x12x8xf32, #tpu.memory_space<vmem>>, vector<1x12x8xf32>
    %8 = vector.shape_cast %7 : vector<1x12x8xf32> to vector<12x8xf32>
    %cst_9 = arith.constant dense<0.000000e+00> : vector<256x8xf32>
    %9 = tpu.matmul %6, %8, %cst_9 {dimension_numbers = #tpu.dot_dimension_numbers<[1], [0], [0], [1], [0, 0, 1, 1], [], []>} : vector<256x12xf32>, vector<12x8xf32>, vector<256x8xf32> -> vector<256x8xf32>
    %10 = arith.addf %4, %9 : vector<256x8xf32>
    %c0_10 = arith.constant 0 : index
    %c32 = arith.constant 32 : index
    %c0_11 = arith.constant 0 : index
    %11 = vector.load %arg0[%c0_10, %c32, %c0_11] : memref<2x288x12xf32, #tpu.memory_space<vmem>>, vector<1x256x12xf32>
    %12 = vector.shape_cast %11 : vector<1x256x12xf32> to vector<256x12xf32>
    %c2 = arith.constant 2 : index
    %c0_12 = arith.constant 0 : index
    %c0_13 = arith.constant 0 : index
    %13 = vector.load %arg1[%c2, %c0_12, %c0_13] : memref<3x12x8xf32, #tpu.memory_space<vmem>>, vector<1x12x8xf32>
    %14 = vector.shape_cast %13 : vector<1x12x8xf32> to vector<12x8xf32>
    %cst_14 = arith.constant dense<0.000000e+00> : vector<256x8xf32>
    %15 = tpu.matmul %12, %14, %cst_14 {dimension_numbers = #tpu.dot_dimension_numbers<[1], [0], [0], [1], [0, 0, 1, 1], [], []>} : vector<256x12xf32>, vector<12x8xf32>, vector<256x8xf32> -> vector<256x8xf32>
    %16 = arith.addf %10, %15 : vector<256x8xf32>
    %c0_15 = arith.constant 0 : index
    %c0_16 = arith.constant 0 : index
    %17 = vector.load %arg2[%c0_15, %c0_16] : memref<1x8xf32, #tpu.memory_space<vmem>>, vector<1x8xf32>
    %18 = vector.broadcast %17 : vector<1x8xf32> to vector<256x8xf32>
    %19 = arith.addf %16, %18 : vector<256x8xf32>
    %cst_17 = arith.constant 0.000000e+00 : f32
    %20 = vector.broadcast %cst_17 : f32 to vector<256x8xf32>
    %21 = arith.maximumf %19, %20 : vector<256x8xf32>
    %cst_18 = arith.constant dense<0.000000e+00> : vector<8xf32>
    %22 = vector.multi_reduction <add>, %21, %cst_18 [0] : vector<256x8xf32> to vector<8xf32>
    %23 = vector.shape_cast %22 : vector<8xf32> to vector<1x8xf32>
    %cst_19 = arith.constant 3.906250e-03 : f32
    %24 = vector.broadcast %cst_19 : f32 to vector<1x8xf32>
    %25 = arith.mulf %23, %24 : vector<1x8xf32>
    %c0_20 = arith.constant 0 : index
    %c0_21 = arith.constant 0 : index
    %26 = vector.load %arg6[%c0_20, %c0_21] : memref<2x8xf32, #tpu.memory_space<vmem>>, vector<1x8xf32>
    tpu.vector_store %arg6[%c0_20, %c0_21], %25 {strides = array<i32>} : memref<2x8xf32, #tpu.memory_space<vmem>>, vector<1x8xf32>,
    %c1_22 = arith.constant 1 : index
    %c0_23 = arith.constant 0 : index
    %c0_24 = arith.constant 0 : index
    %27 = vector.load %arg0[%c1_22, %c0_23, %c0_24] : memref<2x288x12xf32, #tpu.memory_space<vmem>>, vector<1x256x12xf32>
    %28 = vector.shape_cast %27 : vector<1x256x12xf32> to vector<256x12xf32>
    %c0_25 = arith.constant 0 : index
    %c0_26 = arith.constant 0 : index
    %c0_27 = arith.constant 0 : index
    %29 = vector.load %arg1[%c0_25, %c0_26, %c0_27] : memref<3x12x8xf32, #tpu.memory_space<vmem>>, vector<1x12x8xf32>
    %30 = vector.shape_cast %29 : vector<1x12x8xf32> to vector<12x8xf32>
    %cst_28 = arith.constant dense<0.000000e+00> : vector<256x8xf32>
    %31 = tpu.matmul %28, %30, %cst_28 {dimension_numbers = #tpu.dot_dimension_numbers<[1], [0], [0], [1], [0, 0, 1, 1], [], []>} : vector<256x12xf32>, vector<12x8xf32>, vector<256x8xf32> -> vector<256x8xf32>
    %c1_29 = arith.constant 1 : index
    %c16_30 = arith.constant 16 : index
    %c0_31 = arith.constant 0 : index
    %32 = vector.load %arg0[%c1_29, %c16_30, %c0_31] : memref<2x288x12xf32, #tpu.memory_space<vmem>>, vector<1x256x12xf32>
    %33 = vector.shape_cast %32 : vector<1x256x12xf32> to vector<256x12xf32>
    %c1_32 = arith.constant 1 : index
    %c0_33 = arith.constant 0 : index
    %c0_34 = arith.constant 0 : index
    %34 = vector.load %arg1[%c1_32, %c0_33, %c0_34] : memref<3x12x8xf32, #tpu.memory_space<vmem>>, vector<1x12x8xf32>
    %35 = vector.shape_cast %34 : vector<1x12x8xf32> to vector<12x8xf32>
    %cst_35 = arith.constant dense<0.000000e+00> : vector<256x8xf32>
    %36 = tpu.matmul %33, %35, %cst_35 {dimension_numbers = #tpu.dot_dimension_numbers<[1], [0], [0], [1], [0, 0, 1, 1], [], []>} : vector<256x12xf32>, vector<12x8xf32>, vector<256x8xf32> -> vector<256x8xf32>
    %37 = arith.addf %31, %36 : vector<256x8xf32>
    %c1_36 = arith.constant 1 : index
    %c32_37 = arith.constant 32 : index
    %c0_38 = arith.constant 0 : index
    %38 = vector.load %arg0[%c1_36, %c32_37, %c0_38] : memref<2x288x12xf32, #tpu.memory_space<vmem>>, vector<1x256x12xf32>
    %39 = vector.shape_cast %38 : vector<1x256x12xf32> to vector<256x12xf32>
    %c2_39 = arith.constant 2 : index
    %c0_40 = arith.constant 0 : index
    %c0_41 = arith.constant 0 : index
    %40 = vector.load %arg1[%c2_39, %c0_40, %c0_41] : memref<3x12x8xf32, #tpu.memory_space<vmem>>, vector<1x12x8xf32>
    %41 = vector.shape_cast %40 : vector<1x12x8xf32> to vector<12x8xf32>
    %cst_42 = arith.constant dense<0.000000e+00> : vector<256x8xf32>
    %42 = tpu.matmul %39, %41, %cst_42 {dimension_numbers = #tpu.dot_dimension_numbers<[1], [0], [0], [1], [0, 0, 1, 1], [], []>} : vector<256x12xf32>, vector<12x8xf32>, vector<256x8xf32> -> vector<256x8xf32>
    %43 = arith.addf %37, %42 : vector<256x8xf32>
    %c0_43 = arith.constant 0 : index
    %c0_44 = arith.constant 0 : index
    %44 = vector.load %arg2[%c0_43, %c0_44] : memref<1x8xf32, #tpu.memory_space<vmem>>, vector<1x8xf32>
    %45 = vector.broadcast %44 : vector<1x8xf32> to vector<256x8xf32>
    %46 = arith.addf %43, %45 : vector<256x8xf32>
    %cst_45 = arith.constant 0.000000e+00 : f32
    %47 = vector.broadcast %cst_45 : f32 to vector<256x8xf32>
    %48 = arith.maximumf %46, %47 : vector<256x8xf32>
    %cst_46 = arith.constant dense<0.000000e+00> : vector<8xf32>
    %49 = vector.multi_reduction <add>, %48, %cst_46 [0] : vector<256x8xf32> to vector<8xf32>
    %50 = vector.shape_cast %49 : vector<8xf32> to vector<1x8xf32>
    %cst_47 = arith.constant 3.906250e-03 : f32
    %51 = vector.broadcast %cst_47 : f32 to vector<1x8xf32>
    %52 = arith.mulf %50, %51 : vector<1x8xf32>
    %c1_48 = arith.constant 1 : index
    %c0_49 = arith.constant 0 : index
    %53 = vector.load %arg6[%c1_48, %c0_49] : memref<2x8xf32, #tpu.memory_space<vmem>>, vector<1x8xf32>
    tpu.vector_store %arg6[%c1_48, %c0_49], %52 {strides = array<i32>} : memref<2x8xf32, #tpu.memory_space<vmem>>, vector<1x8xf32>,
    %c0_50 = arith.constant 0 : index
    %c0_51 = arith.constant 0 : index
    %54 = vector.load %arg6[%c0_50, %c0_51] : memref<2x8xf32, #tpu.memory_space<vmem>>, vector<2x8xf32>
    %c0_52 = arith.constant 0 : index
    %c0_53 = arith.constant 0 : index
    %55 = vector.load %arg3[%c0_52, %c0_53] : memref<8x128xf32, #tpu.memory_space<vmem>>, vector<8x128xf32>
    %cst_54 = arith.constant dense<0.000000e+00> : vector<2x128xf32>
    %56 = tpu.matmul %54, %55, %cst_54 {dimension_numbers = #tpu.dot_dimension_numbers<[1], [0], [0], [1], [0, 0, 1, 1], [], []>} : vector<2x8xf32>, vector<8x128xf32>, vector<2x128xf32> -> vector<2x128xf32>
    %c0_55 = arith.constant 0 : index
    %c0_56 = arith.constant 0 : index
    %57 = vector.load %arg4[%c0_55, %c0_56] : memref<1x128xf32, #tpu.memory_space<vmem>>, vector<1x128xf32>
    %58 = vector.broadcast %57 : vector<1x128xf32> to vector<2x128xf32>
    %59 = arith.addf %56, %58 : vector<2x128xf32>
    %c0_57 = arith.constant 0 : index
    %c0_58 = arith.constant 0 : index
    %60 = vector.load %arg5[%c0_57, %c0_58] : memref<2x128xf32, #tpu.memory_space<vmem>>, vector<2x128xf32>
    tpu.vector_store %arg5[%c0_57, %c0_58], %59 {strides = array<i32>} : memref<2x128xf32, #tpu.memory_space<vmem>>, vector<2x128xf32>,
    return
  }
}

</mosaic_0001>

<bundles_post_ra>
// kernel: tpu_custom_call.1
= control target key start
LH: loop header
LB: loop body
LE: loop exit
PB: predicated region body
PF: predicated region fallthrough
CT: control target
= control target key end

     0   :  { %vm157_vm0 = vcmask 1043456   ;;  %vm3372_vm1 = vmmov 1   ;;  %vm60_vm3 = vcmask 97280   ;;  %s4341_s0 = inlined_call_operand.vmem [shape: f32[2,288,12], index: 0, kind: input, shape index: {}]   ;;  %s4342_s1 = inlined_call_operand.vmem [shape: f32[3,12,8], index: 1, kind: input, shape index: {}]   ;;  %s4343_s2 = inlined_call_operand.vmem [shape: f32[1,8], index: 2, kind: input, shape index: {}]   ;;  %s4344_s3 = inlined_call_operand.vmem [shape: f32[8,128], index: 3, kind: input, shape index: {}]   ;;  %s4345_s4 = inlined_call_operand.vmem [shape: f32[1,128], index: 4, kind: input, shape index: {}]   ;;  %s4346_s5 = inlined_call_operand.hbm [shape: f32[2,128], index: 5, kind: output, shape index: {}]  }
   0x1   :  { %v2381_v0 = vld [vmem:[%s4342_s1 + $0x10] sm:$0xff]  ;;  %v2382_v1 = vld [vmem:[%s4342_s1 + $0x18] sm:$0xf]  ;;  %vm3417_vm2 = vmpackc.low %vm157_vm0, %vm3372_vm1 }
   0x2   :  { %v3415_v2 = vld [vmem:[%s4341_s0 + $0x10] sm:$0xff]  ;;  %v3180_v3 = vpack.c.bf16 %v2382_v1, %v2381_v0  ;;  %v2520_v5 = vld [vmem:[%s4342_s1 + $0x18] sm:$0xf]  ;;  %v53_v8 = vld [vmem:[%s4342_s1] sm:$0xff] }
   0x3   :  { %v3427_v6 = vld [vmem:[%s4341_s0 + $0x130] sm:$0xff]  ;;  %v3198_v7 = vpack.c.bf16 %v2520_v5, %v2381_v0  ;;  %2867 = vmatprep.mubr.msk.f32.mxu0 %vm60_vm3, %v3415_v2  ;;  %v54_v9 = vld [vmem:[%s4342_s1 + $0x8] sm:$0xf]  ;;  %v3451_v12 = vld [vmem:[%s4341_s0 + $0x18] sm:$0xff] }
   0x4   :  { %3023 = vmatprep.mubr.msk.f32.mxu1 %vm60_vm3, %v3427_v6  ;;  %3182 = vmatprep.subr.msk.bf16.mxu0 %vm3417_vm2, %v3180_v3  ;;  %v3186_v10 = vpack.c.bf16 %v54_v9, %v53_v8  ;;  %v1189_v11 = vld [vmem:[%s4342_s1 + $0x8] sm:$0xf]  ;;  %v3460_v14 = vld [vmem:[%s4341_s0 + $0x138] sm:$0xff]  ;;  %v3467_v15 = vld [vmem:[%s4341_s0 + $0x20] sm:$0xff] }
   0x5   :  { %3200 = vmatprep.subr.msk.bf16.mxu1 %vm3417_vm2, %v3198_v7  ;;  %3185 = vmatpush3.bf16.msk.msra.mxu0 %vm3417_vm2, %v3180_v3  ;;  %v3204_v13 = vpack.c.bf16 %v1189_v11, %v53_v8  ;;  %v3474_v16 = vld [vmem:[%s4341_s0 + $0x140] sm:$0xff]  ;;  %v3483_v17 = vld [vmem:[%s4341_s0 + $0x28] sm:$0xff]  ;;  %v3497_v19 = vld [vmem:[%s4341_s0 + $0x30] sm:$0xff] }
   0x6   :  { %3203 = vmatpush3.bf16.msk.msra.mxu1 %vm3417_vm2, %v3198_v7  ;;  %3188 = vmatprep.subr.msk.bf16.mxu0 %vm3417_vm2, %v3186_v10  ;;  %v3492_v18 = vld [vmem:[%s4341_s0 + $0x148] sm:$0xff]  ;;  %v3504_v20 = vld [vmem:[%s4341_s0 + $0x150] sm:$0xff]  ;;  %v3515_v21 = vld [vmem:[%s4341_s0 + $0x38] sm:$0xff] }
   0x7   :  { %3206 = vmatprep.subr.msk.bf16.mxu1 %vm3417_vm2, %v3204_v13  ;;  %v3522_v22 = vld [vmem:[%s4341_s0 + $0x158] sm:$0xff]  ;;  %v3527_v23 = vld [vmem:[%s4341_s0 + $0x40] sm:$0xff]  ;;  %v3543_v25 = vld [vmem:[%s4341_s0 + $0x48] sm:$0xff] }
   0x8   :  { %2868 = vmatmul.mubr.msk.f32.vlgmr.msra.gmra.mrb[0].mxu0 %vm60_vm3, %v3451_v12  ;;  %v3532_v24 = vld [vmem:[%s4341_s0 + $0x160] sm:$0xff]  ;;  %v3550_v26 = vld [vmem:[%s4341_s0 + $0x168] sm:$0xff]  ;;  %v3555_v27 = vld [vmem:[%s4341_s0 + $0x50] sm:$0xff] }
   0x9   :  { %3024 = vmatmul.mubr.msk.f32.vlgmr.msra.gmra.mrb[0].mxu1 %vm60_vm3, %v3460_v14  ;;  %3191 = vmatpush3.bf16.msk.msra.mxu0 %vm3417_vm2, %v3186_v10  ;;  %v3560_v28 = vld [vmem:[%s4341_s0 + $0x170] sm:$0xff]  ;;  %v3571_v29 = vld [vmem:[%s4341_s0 + $0x58] sm:$0xff]  ;;  %v3583_v31 = vld [vmem:[%s4341_s0 + $0x60] sm:$0xff] }
   0xa   :  { %3209 = vmatpush3.bf16.msk.msra.mxu1 %vm3417_vm2, %v3204_v13  ;;  %2870 = vmatprep.mubr.msk.f32.mxu0 %vm60_vm3, %v3467_v15  ;;  %v3578_v30 = vld [vmem:[%s4341_s0 + $0x178] sm:$0xff]  ;;  %v3588_v32 = vld [vmem:[%s4341_s0 + $0x180] sm:$0xff]  ;;  %v3599_v33 = vld [vmem:[%s4341_s0 + $0x68] sm:$0xff] }
   0xb   :  { %3026 = vmatprep.mubr.msk.f32.mxu1 %vm60_vm3, %v3474_v16  ;;  %v3604_v34 = vld [vmem:[%s4341_s0 + $0x188] sm:$0xff]  ;;  %v2449_v35 = vld [vmem:[%s4342_s1 + $0x20] sm:$0xff]  ;;  %v3614_v36 = vld [vmem:[%s4341_s0 + $0x70] sm:$0xff] }
   0xc   :  { %2871 = vmatmul.mubr.msk.f32.gmra.mrb[2].mxu0 %vm60_vm3, %v3483_v17  ;;  %v2450_v37 = vld [vmem:[%s4342_s1 + $0x28] sm:$0xf]  ;;  %v3625_v39 = vld [vmem:[%s4341_s0 + $0x190] sm:$0xff] }
   0xd   :  { %3027 = vmatmul.mubr.msk.f32.gmra.mrb[2].mxu1 %vm60_vm3, %v3492_v18  ;;  %2873 = vmatprep.mubr.msk.f32.mxu0 %vm60_vm3, %v3497_v19  ;;  %v2620_v38 = vld [vmem:[%s4342_s1 + $0x28] sm:$0xf]  ;;  %v3627_v40 = vpack.c.bf16 %v2450_v37, %v2449_v35 }
   0xe   :  { %3029 = vmatprep.mubr.msk.f32.mxu1 %vm60_vm3, %v3504_v20  ;;  %v3629_v41 = vpack.c.bf16 %v2620_v38, %v2449_v35 }
  0x10   :  { %2874 = vmatmul.mubr.msk.f32.gmra.mrb[4].mxu0 %vm60_vm3, %v3515_v21 }
  0x11   :  { %3030 = vmatmul.mubr.msk.f32.gmra.mrb[4].mxu1 %vm60_vm3, %v3522_v22  ;;  %2876 = vmatprep.mubr.msk.f32.mxu0 %vm60_vm3, %v3527_v23 }
  0x12   :  { %3032 = vmatprep.mubr.msk.f32.mxu1 %vm60_vm3, %v3532_v24 }
  0x14   :  { %2877 = vmatmul.mubr.msk.f32.gmra.mrb[6].mxu0 %vm60_vm3, %v3543_v25 }
  0x15   :  { %3033 = vmatmul.mubr.msk.f32.gmra.mrb[6].mxu1 %vm60_vm3, %v3550_v26  ;;  %2879 = vmatprep.mubr.msk.f32.mxu0 %vm60_vm3, %v3555_v27 }
  0x16   :  { %3035 = vmatprep.mubr.msk.f32.mxu1 %vm60_vm3, %v3560_v28 }
  0x18   :  { %2880 = vmatmul.mubr.msk.f32.gmra.mrb[8].mxu0 %vm60_vm3, %v3571_v29 }
  0x19   :  { %3036 = vmatmul.mubr.msk.f32.gmra.mrb[8].mxu1 %vm60_vm3, %v3578_v30  ;;  %2882 = vmatprep.mubr.msk.f32.mxu0 %vm60_vm3, %v3583_v31 }
  0x1a   :  { %3038 = vmatprep.mubr.msk.f32.mxu1 %vm60_vm3, %v3588_v32 }
  0x1b   :  { %10 = vsyncpa [#allocation4], 0  ;;  %v3640_v42 = vld [vmem:[%s4341_s0 + $0x78] sm:$0xff]  ;;  %v3652_v44 = vld [vmem:[%s4341_s0 + $0x80] sm:$0xff]  ;;  %3194 = vmatprep.subr.msk.bf16.mxu0 %vm3417_vm2, %v3627_v40  ;;  %3212 = vmatprep.subr.msk.bf16.mxu1 %vm3417_vm2, %v3629_v41  ;;  %vm3374_vm4 = vmmov 0   ;;  %vm1082_vm5 = vcmask 64512  }
  0x1c   :  { %2883 = vmatmul.mubr.msk.f32.gmra.mrb[10].mxu0 %vm60_vm3, %v3599_v33  ;;  %v3647_v43 = vld [vmem:[%s4341_s0 + $0x198] sm:$0xff]  ;;  %v3660_v45 = vld [vmem:[%s4341_s0 + $0x1a0] sm:$0xff]  ;;  %v3674_v46 = vld [vmem:[%s4341_s0 + $0x88] sm:$0xff]  ;;  %vm1153_vm6 = vcmask 57344  }
  0x1d   :  { %3039 = vmatmul.mubr.msk.f32.gmra.mrb[10].mxu1 %vm60_vm3, %v3604_v34  ;;  %2885 = vmatprep.mubr.msk.f32.mxu0 %vm60_vm3, %v3614_v36  ;;  %v3681_v47 = vld [vmem:[%s4341_s0 + $0x1a8] sm:$0xff]  ;;  %v3686_v48 = vld [vmem:[%s4341_s0 + $0x90] sm:$0xff]  ;;  %v3702_v50 = vld [vmem:[%s4341_s0 + $0x98] sm:$0xff] }
  0x1e   :  { %3041 = vmatprep.mubr.msk.f32.mxu1 %vm60_vm3, %v3625_v39  ;;  %v3691_v49 = vld [vmem:[%s4341_s0 + $0x1b0] sm:$0xff]  ;;  %v3709_v51 = vld [vmem:[%s4341_s0 + $0x1b8] sm:$0xff]  ;;  %v3714_v52 = vld [vmem:[%s4341_s0 + $0xa0] sm:$0xff] }
  0x1f   :  { %v3719_v53 = vld [vmem:[%s4341_s0 + $0x1c0] sm:$0xff]  ;;  %v3730_v54 = vld [vmem:[%s4341_s0 + $0xa8] sm:$0xff]  ;;  %v3742_v56 = vld [vmem:[%s4341_s0 + $0xb0] sm:$0xff] }
  0x20   :  { %2886 = vmatmul.mubr.msk.f32.gmra.mrb[12].mxu0 %vm60_vm3, %v3640_v42  ;;  %v3737_v55 = vld [vmem:[%s4341_s0 + $0x1c8] sm:$0xff]  ;;  %v3747_v57 = vld [vmem:[%s4341_s0 + $0x1d0] sm:$0xff]  ;;  %v3758_v58 = vld [vmem:[%s4341_s0 + $0xb8] sm:$0xff] }
  0x21   :  { %3042 = vmatmul.mubr.msk.f32.gmra.mrb[12].mxu1 %vm60_vm3, %v3647_v43  ;;  %2888 = vmatprep.mubr.msk.f32.mxu0 %vm60_vm3, %v3652_v44  ;;  %v3765_v59 = vld [vmem:[%s4341_s0 + $0x1d8] sm:$0xff]  ;;  %v3770_v60 = vld [vmem:[%s4341_s0 + $0xc0] sm:$0xff]  ;;  %v3786_v62 = vld [vmem:[%s4341_s0 + $0xc8] sm:$0xff] }
  0x22   :  { %3044 = vmatprep.mubr.msk.f32.mxu1 %vm60_vm3, %v3660_v45  ;;  %v3775_v61 = vld [vmem:[%s4341_s0 + $0x1e0] sm:$0xff]  ;;  %v3793_v63 = vld [vmem:[%s4341_s0 + $0x1e8] sm:$0xff]  ;;  %v3798_v0 = vld [vmem:[%s4341_s0 + $0xd0] sm:$0xff] }
  0x23   :  { %v3803_v1 = vld [vmem:[%s4341_s0 + $0x1f0] sm:$0xff]  ;;  %v3814_v3 = vld [vmem:[%s4341_s0 + $0xd8] sm:$0xff]  ;;  %v3826_v7 = vld [vmem:[%s4341_s0 + $0xe0] sm:$0xff] }
  0x24   :  { %2889 = vmatmul.mubr.msk.f32.gmra.mrb[14].mxu0 %vm60_vm3, %v3674_v46  ;;  %v3821_v5 = vld [vmem:[%s4341_s0 + $0x1f8] sm:$0xff]  ;;  %v3831_v8 = vld [vmem:[%s4341_s0 + $0x200] sm:$0xff]  ;;  %v3842_v9 = vld [vmem:[%s4341_s0 + $0xe8] sm:$0xff] }
  0x25   :  { %3045 = vmatmul.mubr.msk.f32.gmra.mrb[14].mxu1 %vm60_vm3, %v3681_v47  ;;  %2891 = vmatprep.mubr.msk.f32.mxu0 %vm60_vm3, %v3686_v48  ;;  %v3849_v10 = vld [vmem:[%s4341_s0 + $0x208] sm:$0xff]  ;;  %v3854_v11 = vld [vmem:[%s4341_s0 + $0xf0] sm:$0xff]  ;;  %v3870_v35 = vld [vmem:[%s4341_s0 + $0xf8] sm:$0xff] }
  0x26   :  { %3047 = vmatprep.mubr.msk.f32.mxu1 %vm60_vm3, %v3691_v49  ;;  %4361 = vst [vmem:[#allocation6_spill] sm:$0xff] %v3849_v10  ;;  %4362 = vst [vmem:[#allocation7_spill] sm:$0xff] %v3854_v11  ;;  %v3859_v13 = vld [vmem:[%s4341_s0 + $0x210] sm:$0xff]  ;;  %v3877_v37 = vld [vmem:[%s4341_s0 + $0x218] sm:$0xff] }
  0x27   :  { %4363 = vst [vmem:[#allocation8_spill] sm:$0xff] %v3859_v13  ;;  %4364 = vst [vmem:[#allocation9_spill] sm:$0xff] %v3870_v35  ;;  %v3882_v38 = vld [vmem:[%s4341_s0 + $0x100] sm:$0xff] }
  0x28   :  { %2892 = vmatmul.mubr.msk.f32.gmra.mrb[16].mxu0 %vm60_vm3, %v3702_v50  ;;  %4365 = vst [vmem:[#allocation10_spill] sm:$0xff] %v3877_v37  ;;  %4366 = vst [vmem:[#allocation11_spill] sm:$0xff] %v3882_v38 }
  0x29   :  { %3048 = vmatmul.mubr.msk.f32.gmra.mrb[16].mxu1 %vm60_vm3, %v3709_v51  ;;  %2894 = vmatprep.mubr.msk.f32.mxu0 %vm60_vm3, %v3714_v52 }
  0x2a   :  { %3050 = vmatprep.mubr.msk.f32.mxu1 %vm60_vm3, %v3719_v53 }
  0x2c   :  { %2895 = vmatmul.mubr.msk.f32.gmra.mrb[18].mxu0 %vm60_vm3, %v3730_v54 }
  0x2d   :  { %3051 = vmatmul.mubr.msk.f32.gmra.mrb[18].mxu1 %vm60_vm3, %v3737_v55  ;;  %2897 = vmatprep.mubr.msk.f32.mxu0 %vm60_vm3, %v3742_v56  ;;  %v4369_v4 = vld [vmem:[#allocation7_spill] sm:$0xff] }
  0x2e   :  { %3053 = vmatprep.mubr.msk.f32.mxu1 %vm60_vm3, %v3747_v57 }
  0x30   :  { %2898 = vmatmul.mubr.msk.f32.gmra.mrb[20].mxu0 %vm60_vm3, %v3758_v58 }
  0x31   :  { %3054 = vmatmul.mubr.msk.f32.gmra.mrb[20].mxu1 %vm60_vm3, %v3765_v59  ;;  %2900 = vmatprep.mubr.msk.f32.mxu0 %vm60_vm3, %v3770_v60 }
  0x32   :  { %3056 = vmatprep.mubr.msk.f32.mxu1 %vm60_vm3, %v3775_v61 }
  0x34   :  { %2901 = vmatmul.mubr.msk.f32.gmra.mrb[22].mxu0 %vm60_vm3, %v3786_v62 }
  0x35   :  { %3057 = vmatmul.mubr.msk.f32.gmra.mrb[22].mxu1 %vm60_vm3, %v3793_v63  ;;  %2903 = vmatprep.mubr.msk.f32.mxu0 %vm60_vm3, %v3798_v0 }
  0x36   :  { %3059 = vmatprep.mubr.msk.f32.mxu1 %vm60_vm3, %v3803_v1 }
  0x38   :  { %2904 = vmatmul.mubr.msk.f32.gmra.mrb[24].mxu0 %vm60_vm3, %v3814_v3 }
  0x39   :  { %3060 = vmatmul.mubr.msk.f32.gmra.mrb[24].mxu1 %vm60_vm3, %v3821_v5  ;;  %2906 = vmatprep.mubr.msk.f32.mxu0 %vm60_vm3, %v3826_v7 }
  0x3a   :  { %3062 = vmatprep.mubr.msk.f32.mxu1 %vm60_vm3, %v3831_v8 }
  0x3c   :  { %2907 = vmatmul.mubr.msk.f32.gmra.mrb[26].mxu0 %vm60_vm3, %v3842_v9 }
  0x3d   :  { %3063 = vmatmul.mubr.msk.f32.gmra.mrb[26].mxu1 %vm60_vm3, %v3849_v10  ;;  %2909 = vmatprep.mubr.msk.f32.mxu0 %vm60_vm3, %v3854_v11  ;;  %v3887_v11 = vld [vmem:[%s4341_s0 + $0x220] sm:$0xff]  ;;  %v3905_v10 = vld [vmem:[%s4341_s0 + $0x228] sm:$0xff] }
  0x3e   :  { %3065 = vmatprep.mubr.msk.f32.mxu1 %vm60_vm3, %v3859_v13  ;;  %4367 = vst [vmem:[#allocation12_spill] sm:$0xff] %v3887_v11  ;;  %v3898_v13 = vld [vmem:[%s4341_s0 + $0x108] sm:$0xff] }
  0x40   :  { %2910 = vmatmul.mubr.msk.f32.gmra.mrb[28].mxu0 %vm60_vm3, %v3870_v35  ;;  %v2486_v35 = vld [vmem:[%s4341_s0 + $0x128] sm:$0xff] }
  0x41   :  { %3066 = vmatmul.mubr.msk.f32.gmra.mrb[28].mxu1 %vm60_vm3, %v3877_v37  ;;  %2912 = vmatprep.mubr.msk.f32.mxu0 %vm60_vm3, %v3882_v38  ;;  %v21_v37 = vld [vmem:[%s4341_s0] sm:$0xff] }
  0x42   :  { %3068 = vmatprep.mubr.msk.f32.mxu1 %vm60_vm3, %v3887_v11  ;;  %v2485_v38 = vld [vmem:[%s4341_s0 + $0x120] sm:$0xff]  ;;  %v22_v11 = vld [vmem:[%s4341_s0 + $0x8] sm:$0xff] }
  0x44   :  { %2913 = vmatmul.mubr.msk.f32.gmra.mrb[30].mxu0 %vm60_vm3, %v3898_v13 }
  0x45   :  { %3069 = vmatmul.mubr.msk.f32.gmra.mrb[30].mxu1 %vm60_vm3, %v3905_v10  ;;  %2919 = vmatprep.mubr.msk.f32.mxu0 %vm60_vm3, %v21_v37 }
  0x46   :  { %3075 = vmatprep.mubr.msk.f32.mxu1 %vm60_vm3, %v2485_v38 }
  0x48   :  { %2920 = vmatmul.mubr.msk.f32.vlgmr.msra.gmra.mrb[0].mxu0 %vm60_vm3, %v22_v11 }
  0x49   :  { %3076 = vmatmul.mubr.msk.f32.vlgmr.msra.gmra.mrb[0].mxu1 %vm60_vm3, %v2486_v35  ;;  %3197 = vmatpush3.bf16.msk.msra.mxu0 %vm3417_vm2, %v3627_v40 }
  0x4a   :  { %3215 = vmatpush3.bf16.msk.msra.mxu1 %vm3417_vm2, %v3629_v41  ;;  %2922 = vmatprep.mubr.msk.f32.mxu0 %vm60_vm3, %v3415_v2  ;;  %v4368_v2 = vld [vmem:[#allocation6_spill] sm:$0xff] }
  0x4b   :  { %3078 = vmatprep.mubr.msk.f32.mxu1 %vm60_vm3, %v3427_v6  ;;  %v4370_v6 = vld [vmem:[#allocation8_spill] sm:$0xff] }
  0x4c   :  { %2923 = vmatmul.mubr.msk.f32.gmra.mrb[2].mxu0 %vm60_vm3, %v3451_v12  ;;  %v4371_v12 = vld [vmem:[#allocation9_spill] sm:$0xff] }
  0x4d   :  { %3079 = vmatmul.mubr.msk.f32.gmra.mrb[2].mxu1 %vm60_vm3, %v3460_v14  ;;  %2925 = vmatprep.mubr.msk.f32.mxu0 %vm60_vm3, %v3467_v15  ;;  %v4372_v14 = vld [vmem:[#allocation10_spill] sm:$0xff] }
  0x4e   :  { %3081 = vmatprep.mubr.msk.f32.mxu1 %vm60_vm3, %v3474_v16 }
  0x50   :  { %2926 = vmatmul.mubr.msk.f32.gmra.mrb[4].mxu0 %vm60_vm3, %v3483_v17 }
  0x51   :  { %3082 = vmatmul.mubr.msk.f32.gmra.mrb[4].mxu1 %vm60_vm3, %v3492_v18  ;;  %2928 = vmatprep.mubr.msk.f32.mxu0 %vm60_vm3, %v3497_v19 }
  0x52   :  { %3084 = vmatprep.mubr.msk.f32.mxu1 %vm60_vm3, %v3504_v20 }
  0x54   :  { %2929 = vmatmul.mubr.msk.f32.gmra.mrb[6].mxu0 %vm60_vm3, %v3515_v21 }
  0x55   :  { %3085 = vmatmul.mubr.msk.f32.gmra.mrb[6].mxu1 %vm60_vm3, %v3522_v22  ;;  %2931 = vmatprep.mubr.msk.f32.mxu0 %vm60_vm3, %v3527_v23 }
  0x56   :  { %3087 = vmatprep.mubr.msk.f32.mxu1 %vm60_vm3, %v3532_v24 }
  0x58   :  { %2932 = vmatmul.mubr.msk.f32.gmra.mrb[8].mxu0 %vm60_vm3, %v3543_v25 }
  0x59   :  { %3088 = vmatmul.mubr.msk.f32.gmra.mrb[8].mxu1 %vm60_vm3, %v3550_v26  ;;  %2934 = vmatprep.mubr.msk.f32.mxu0 %vm60_vm3, %v3555_v27 }
  0x5a   :  { %3090 = vmatprep.mubr.msk.f32.mxu1 %vm60_vm3, %v3560_v28 }
  0x5c   :  { %2935 = vmatmul.mubr.msk.f32.gmra.mrb[10].mxu0 %vm60_vm3, %v3571_v29 }
  0x5d   :  { %3091 = vmatmul.mubr.msk.f32.gmra.mrb[10].mxu1 %vm60_vm3, %v3578_v30  ;;  %2937 = vmatprep.mubr.msk.f32.mxu0 %vm60_vm3, %v3583_v31 }
  0x5e   :  { %3093 = vmatprep.mubr.msk.f32.mxu1 %vm60_vm3, %v3588_v32 }
  0x60   :  { %2938 = vmatmul.mubr.msk.f32.gmra.mrb[12].mxu0 %vm60_vm3, %v3599_v33 }
  0x61   :  { %3094 = vmatmul.mubr.msk.f32.gmra.mrb[12].mxu1 %vm60_vm3, %v3604_v34  ;;  %2940 = vmatprep.mubr.msk.f32.mxu0 %vm60_vm3, %v3614_v36 }
  0x62   :  { %3096 = vmatprep.mubr.msk.f32.mxu1 %vm60_vm3, %v3625_v39 }
  0x64   :  { %2941 = vmatmul.mubr.msk.f32.gmra.mrb[14].mxu0 %vm60_vm3, %v3640_v42 }
  0x65   :  { %3097 = vmatmul.mubr.msk.f32.gmra.mrb[14].mxu1 %vm60_vm3, %v3647_v43  ;;  %2943 = vmatprep.mubr.msk.f32.mxu0 %vm60_vm3, %v3652_v44 }
  0x66   :  { %3099 = vmatprep.mubr.msk.f32.mxu1 %vm60_vm3, %v3660_v45 }
  0x68   :  { %2944 = vmatmul.mubr.msk.f32.gmra.mrb[16].mxu0 %vm60_vm3, %v3674_v46 }
  0x69   :  { %3100 = vmatmul.mubr.msk.f32.gmra.mrb[16].mxu1 %vm60_vm3, %v3681_v47  ;;  %2946 = vmatprep.mubr.msk.f32.mxu0 %vm60_vm3, %v3686_v48 }
  0x6a   :  { %3102 = vmatprep.mubr.msk.f32.mxu1 %vm60_vm3, %v3691_v49 }
  0x6c   :  { %2947 = vmatmul.mubr.msk.f32.gmra.mrb[18].mxu0 %vm60_vm3, %v3702_v50 }
  0x6d   :  { %3103 = vmatmul.mubr.msk.f32.gmra.mrb[18].mxu1 %vm60_vm3, %v3709_v51  ;;  %2949 = vmatprep.mubr.msk.f32.mxu0 %vm60_vm3, %v3714_v52 }
  0x6e   :  { %3105 = vmatprep.mubr.msk.f32.mxu1 %vm60_vm3, %v3719_v53 }
  0x70   :  { %2950 = vmatmul.mubr.msk.f32.gmra.mrb[20].mxu0 %vm60_vm3, %v3730_v54 }
  0x71   :  { %3106 = vmatmul.mubr.msk.f32.gmra.mrb[20].mxu1 %vm60_vm3, %v3737_v55  ;;  %2952 = vmatprep.mubr.msk.f32.mxu0 %vm60_vm3, %v3742_v56 }
  0x72   :  { %3108 = vmatprep.mubr.msk.f32.mxu1 %vm60_vm3, %v3747_v57 }
  0x74   :  { %2953 = vmatmul.mubr.msk.f32.gmra.mrb[22].mxu0 %vm60_vm3, %v3758_v58 }
  0x75   :  { %3109 = vmatmul.mubr.msk.f32.gmra.mrb[22].mxu1 %vm60_vm3, %v3765_v59  ;;  %2955 = vmatprep.mubr.msk.f32.mxu0 %vm60_vm3, %v3770_v60 }
  0x76   :  { %3111 = vmatprep.mubr.msk.f32.mxu1 %vm60_vm3, %v3775_v61 }
  0x78   :  { %2956 = vmatmul.mubr.msk.f32.gmra.mrb[24].mxu0 %vm60_vm3, %v3786_v62 }
  0x79   :  { %3112 = vmatmul.mubr.msk.f32.gmra.mrb[24].mxu1 %vm60_vm3, %v3793_v63  ;;  %2958 = vmatprep.mubr.msk.f32.mxu0 %vm60_vm3, %v3798_v0 }
  0x7a   :  { %3114 = vmatprep.mubr.msk.f32.mxu1 %vm60_vm3, %v3803_v1 }
  0x7c   :  { %2959 = vmatmul.mubr.msk.f32.gmra.mrb[26].mxu0 %vm60_vm3, %v3814_v3 }
  0x7d   :  { %3115 = vmatmul.mubr.msk.f32.gmra.mrb[26].mxu1 %vm60_vm3, %v3821_v5  ;;  %2961 = vmatprep.mubr.msk.f32.mxu0 %vm60_vm3, %v3826_v7 }
  0x7e   :  { %3117 = vmatprep.mubr.msk.f32.mxu1 %vm60_vm3, %v3831_v8 }
  0x80   :  { %2962 = vmatmul.mubr.msk.f32.gmra.mrb[28].mxu0 %vm60_vm3, %v3842_v9 }
  0x81   :  { %3118 = vmatmul.mubr.msk.f32.gmra.mrb[28].mxu1 %vm60_vm3, %v4368_v2  ;;  %2964 = vmatprep.mubr.msk.f32.mxu0 %vm60_vm3, %v4369_v4 }
  0x82   :  { %3120 = vmatprep.mubr.msk.f32.mxu1 %vm60_vm3, %v4370_v6 }
  0x84   :  { %2965 = vmatmul.mubr.msk.f32.gmra.mrb[30].mxu0 %vm60_vm3, %v4371_v12 }
  0x85   :  { %3121 = vmatmul.mubr.msk.f32.gmra.mrb[30].mxu1 %vm60_vm3, %v4372_v14  ;;  %2971 = vmatprep.mubr.msk.f32.mxu0 %vm60_vm3, %v3467_v15  ;;  %v4373_v15 = vld [vmem:[#allocation11_spill] sm:$0xff] }
  0x86   :  { %3127 = vmatprep.mubr.msk.f32.mxu1 %vm60_vm3, %v3474_v16  ;;  %v4374_v16 = vld [vmem:[#allocation12_spill] sm:$0xff] }
  0x88   :  { %2972 = vmatmul.mubr.msk.f32.vlgmr.msra.gmra.mrb[0].mxu0 %vm60_vm3, %v3483_v17  ;;  %v650_v17 = vld [vmem:[%s4341_s0 + $0x110] sm:$0xff] }
  0x89   :  { %3128 = vmatmul.mubr.msk.f32.vlgmr.msra.gmra.mrb[0].mxu1 %vm60_vm3, %v3492_v18  ;;  %2974 = vmatprep.mubr.msk.f32.mxu0 %vm60_vm3, %v3497_v19  ;;  %v2617_v18 = vld [vmem:[%s4341_s0 + $0x230] sm:$0xff]  ;;  %v651_v19 = vld [vmem:[%s4341_s0 + $0x118] sm:$0xff] }
  0x8a   :  { %3130 = vmatprep.mubr.msk.f32.mxu1 %vm60_vm3, %v3504_v20  ;;  %v2618_v20 = vld [vmem:[%s4341_s0 + $0x238] sm:$0xff] }
  0x8c   :  { %2975 = vmatmul.mubr.msk.f32.gmra.mrb[2].mxu0 %vm60_vm3, %v3515_v21  ;;  %v2285_v21 = vld [vmem:[%s4344_s3] sm:$0xff]  ;;  %s3375_s3 = smov [#allocation3]  }
  0x8d   :  { %3131 = vmatmul.mubr.msk.f32.gmra.mrb[2].mxu1 %vm60_vm3, %v3522_v22  ;;  %2977 = vmatprep.mubr.msk.f32.mxu0 %vm60_vm3, %v3527_v23  ;;  %v3373_v22 = vmov 0.0   ;;  %v4195_v23 = vld [vmem:[%s4343_s2] ss:$0 sm:$0xff]  ;;  %s2373_s30 = sshll.u32 %s3375_s3, 4  ;;  %s2374_s30 = int_to_ptr.vmem [resolvable:$true] %s2373_s30 }
  0x8e   :  { %3133 = vmatprep.mubr.msk.f32.mxu1 %vm60_vm3, %v3532_v24  ;;  %3175 = vmatprep.subr.mxu0 %v3373_v22  ;;  %s3348_s6 = scalar_lea.vmem %s2374_s30, 32  ;;  %p3353_p1 = scmp.lt.s32.totalorder %s2374_s30, %s2374_s30 }
  0x8f   :  { %3176 = vmatpush3.msra.mxu0 %v2285_v21  ;;  %p3349_p0 = scmp.ne.s32.totalorder %s2374_s30, %s3348_s6  ;;  %p3354_p2 = scmp.lt.s32.totalorder %s3348_s6, %s3348_s6 }
  0x90   :  { %2978 = vmatmul.mubr.msk.f32.gmra.mrb[4].mxu0 %vm60_vm3, %v3543_v25 }
  0x91   :  { %3134 = vmatmul.mubr.msk.f32.gmra.mrb[4].mxu1 %vm60_vm3, %v3550_v26  ;;  %2980 = vmatprep.mubr.msk.f32.mxu0 %vm60_vm3, %v3555_v27  ;;  %p3355_p3 = por %p3354_p2, %p3353_p1 }
  0x92   :  { %3136 = vmatprep.mubr.msk.f32.mxu1 %vm60_vm3, %v3560_v28 }
  0x93   :  { %p3356_p4 = pnand %p3355_p3, %p3349_p0 }
  0x94   :  { %2981 = vmatmul.mubr.msk.f32.gmra.mrb[6].mxu0 %vm60_vm3, %v3571_v29 }
  0x95   :  { %3137 = vmatmul.mubr.msk.f32.gmra.mrb[6].mxu1 %vm60_vm3, %v3578_v30  ;;  %2983 = vmatprep.mubr.msk.f32.mxu0 %vm60_vm3, %v3583_v31 }
  0x96   :  { %3139 = vmatprep.mubr.msk.f32.mxu1 %vm60_vm3, %v3588_v32 }
  0x98   :  { %2984 = vmatmul.mubr.msk.f32.gmra.mrb[8].mxu0 %vm60_vm3, %v3599_v33 }
  0x99   :  { %3140 = vmatmul.mubr.msk.f32.gmra.mrb[8].mxu1 %vm60_vm3, %v3604_v34  ;;  %2986 = vmatprep.mubr.msk.f32.mxu0 %vm60_vm3, %v3614_v36 }
  0x9a   :  { %3142 = vmatprep.mubr.msk.f32.mxu1 %vm60_vm3, %v3625_v39 }
  0x9c   :  { %2987 = vmatmul.mubr.msk.f32.gmra.mrb[10].mxu0 %vm60_vm3, %v3640_v42 }
  0x9d   :  { %3143 = vmatmul.mubr.msk.f32.gmra.mrb[10].mxu1 %vm60_vm3, %v3647_v43  ;;  %2989 = vmatprep.mubr.msk.f32.mxu0 %vm60_vm3, %v3652_v44 }
  0x9e   :  { %3145 = vmatprep.mubr.msk.f32.mxu1 %vm60_vm3, %v3660_v45 }
  0xa0   :  { %2990 = vmatmul.mubr.msk.f32.gmra.mrb[12].mxu0 %vm60_vm3, %v3674_v46 }
  0xa1   :  { %3146 = vmatmul.mubr.msk.f32.gmra.mrb[12].mxu1 %vm60_vm3, %v3681_v47  ;;  %2992 = vmatprep.mubr.msk.f32.mxu0 %vm60_vm3, %v3686_v48 }
  0xa2   :  { %3148 = vmatprep.mubr.msk.f32.mxu1 %vm60_vm3, %v3691_v49 }
  0xa4   :  { %2993 = vmatmul.mubr.msk.f32.gmra.mrb[14].mxu0 %vm60_vm3, %v3702_v50 }
  0xa5   :  { %3149 = vmatmul.mubr.msk.f32.gmra.mrb[14].mxu1 %vm60_vm3, %v3709_v51  ;;  %2995 = vmatprep.mubr.msk.f32.mxu0 %vm60_vm3, %v3714_v52 }
  0xa6   :  { %3151 = vmatprep.mubr.msk.f32.mxu1 %vm60_vm3, %v3719_v53 }
  0xa8   :  { %2996 = vmatmul.mubr.msk.f32.gmra.mrb[16].mxu0 %vm60_vm3, %v3730_v54 }
  0xa9   :  { %3152 = vmatmul.mubr.msk.f32.gmra.mrb[16].mxu1 %vm60_vm3, %v3737_v55  ;;  %2998 = vmatprep.mubr.msk.f32.mxu0 %vm60_vm3, %v3742_v56 }
  0xaa   :  { %3154 = vmatprep.mubr.msk.f32.mxu1 %vm60_vm3, %v3747_v57 }
  0xac   :  { %2999 = vmatmul.mubr.msk.f32.gmra.mrb[18].mxu0 %vm60_vm3, %v3758_v58 }
  0xad   :  { %3155 = vmatmul.mubr.msk.f32.gmra.mrb[18].mxu1 %vm60_vm3, %v3765_v59  ;;  %3001 = vmatprep.mubr.msk.f32.mxu0 %vm60_vm3, %v3770_v60 }
  0xae   :  { %3157 = vmatprep.mubr.msk.f32.mxu1 %vm60_vm3, %v3775_v61 }
  0xb0   :  { %3002 = vmatmul.mubr.msk.f32.gmra.mrb[20].mxu0 %vm60_vm3, %v3786_v62 }
  0xb1   :  { %3158 = vmatmul.mubr.msk.f32.gmra.mrb[20].mxu1 %vm60_vm3, %v3793_v63  ;;  %3004 = vmatprep.mubr.msk.f32.mxu0 %vm60_vm3, %v3798_v0 }
  0xb2   :  { %3160 = vmatprep.mubr.msk.f32.mxu1 %vm60_vm3, %v3803_v1 }
  0xb4   :  { %3005 = vmatmul.mubr.msk.f32.gmra.mrb[22].mxu0 %vm60_vm3, %v3814_v3 }
  0xb5   :  { %3161 = vmatmul.mubr.msk.f32.gmra.mrb[22].mxu1 %vm60_vm3, %v3821_v5  ;;  %3007 = vmatprep.mubr.msk.f32.mxu0 %vm60_vm3, %v3826_v7 }
  0xb6   :  { %3163 = vmatprep.mubr.msk.f32.mxu1 %vm60_vm3, %v3831_v8 }
  0xb8   :  { %3008 = vmatmul.mubr.msk.f32.gmra.mrb[24].mxu0 %vm60_vm3, %v3842_v9 }
  0xb9   :  { %3164 = vmatmul.mubr.msk.f32.gmra.mrb[24].mxu1 %vm60_vm3, %v4368_v2  ;;  %3010 = vmatprep.mubr.msk.f32.mxu0 %vm60_vm3, %v4369_v4 }
  0xba   :  { %3166 = vmatprep.mubr.msk.f32.mxu1 %vm60_vm3, %v4370_v6 }
  0xbc   :  { %3011 = vmatmul.mubr.msk.f32.gmra.mrb[26].mxu0 %vm60_vm3, %v4371_v12 }
  0xbd   :  { %3167 = vmatmul.mubr.msk.f32.gmra.mrb[26].mxu1 %vm60_vm3, %v4372_v14  ;;  %3013 = vmatprep.mubr.msk.f32.mxu0 %vm60_vm3, %v4373_v15 }
  0xbe   :  { %3169 = vmatprep.mubr.msk.f32.mxu1 %vm60_vm3, %v4374_v16 }
  0xc0   :  { %3014 = vmatmul.mubr.msk.f32.gmra.mrb[28].mxu0 %vm60_vm3, %v3898_v13 }
  0xc1   :  { %3170 = vmatmul.mubr.msk.f32.gmra.mrb[28].mxu1 %vm60_vm3, %v3905_v10  ;;  %3016 = vmatprep.mubr.msk.f32.mxu0 %vm60_vm3, %v650_v17 }
  0xc2   :  { %3172 = vmatprep.mubr.msk.f32.mxu1 %vm60_vm3, %v2617_v18 }
  0xc4   :  { %3017 = vmatmul.mubr.msk.f32.gmra.mrb[30].mxu0 %vm60_vm3, %v651_v19 }
  0xc5   :  { %3173 = vmatmul.mubr.msk.f32.gmra.mrb[30].mxu1 %vm60_vm3, %v2618_v20  ;;  %3177 = vmatprep.mubr.msk.f32.mxu0 %vm3374_vm4, %v3373_v22 }
 0x15b   :  { %v2973_v24 = vpop.f32.mrb[0].mxu0 }
 0x15c   :  { %v1019_v25 = vadd.f32 %v2973_v24, %v4195_v23  ;;  %v3129_v26 = vpop.f32.mrb[0].mxu1  ;;  %v820_v27 = vpop.f32.mrb[1].mxu0 }
 0x15d   :  { %v2150_v28 = vadd.f32 %v3129_v26, %v4195_v23  ;;  %v1018_v29 = vadd.f32 %v4195_v23, %v820_v27  ;;  %v1951_v30 = vpop.f32.mrb[1].mxu1 }
 0x15e   :  { %v1051_v31 = vmax.f32 %v1019_v25, 0.0  ;;  %v2149_v32 = vadd.f32 %v4195_v23, %v1951_v30 }
 0x15f   :  { %v2182_v33 = vmax.f32 %v2150_v28, 0.0  ;;  %v1050_v34 = vmax.f32 %v1018_v29, 0.0  ;;  %v2976_v36 = vpop.f32.mrb[2].mxu0 }
 0x160   :  { %v1084_v39 = vsel %vm1082_vm5, %v1051_v31, 0.0  ;;  %v2181_v40 = vmax.f32 %v2149_v32, 0.0  ;;  %v1021_v41 = vadd.f32 %v2976_v36, %v4195_v23  ;;  %v3132_v42 = vpop.f32.mrb[2].mxu1  ;;  %v830_v43 = vpop.f32.mrb[3].mxu0 }
 0x161   :  { %v2214_v44 = vsel %vm1082_vm5, %v2182_v33, 0.0  ;;  %v1083_v45 = vsel %vm1082_vm5, %v1050_v34, 0.0  ;;  %v2152_v46 = vadd.f32 %v3132_v42, %v4195_v23  ;;  %v1020_v47 = vadd.f32 %v4195_v23, %v830_v43  ;;  %v1961_v48 = vpop.f32.mrb[3].mxu1 }
 0x162   :  { %v1085_v49 = vadd.f32 %v1084_v39, %v1083_v45  ;;  %v2213_v50 = vsel %vm1082_vm5, %v2181_v40, 0.0  ;;  %v2151_v51 = vadd.f32 %v4195_v23, %v1961_v48  ;;  %v1053_v53 = vmax.f32 %v1021_v41, 0.0 }
 0x163   :  { %v2215_v52 = vadd.f32 %v2214_v44, %v2213_v50  ;;  %v1052_v54 = vmax.f32 %v1020_v47, 0.0  ;;  %v2979_v55 = vpop.f32.mrb[4].mxu0  ;;  %v2184_v56 = vmax.f32 %v2152_v46, 0.0 }
 0x164   :  { %v2183_v57 = vmax.f32 %v2151_v51, 0.0  ;;  %v1023_v58 = vadd.f32 %v2979_v55, %v4195_v23  ;;  %v3135_v59 = vpop.f32.mrb[4].mxu1  ;;  %v840_v60 = vpop.f32.mrb[5].mxu0  ;;  %v1088_v8 = vsel %vm1082_vm5, %v1053_v53, 0.0 }
 0x165   :  { %v1086_v61 = vsel %vm1082_vm5, %v1052_v54, 0.0  ;;  %v2154_v62 = vadd.f32 %v3135_v59, %v4195_v23  ;;  %v1022_v63 = vadd.f32 %v4195_v23, %v840_v60  ;;  %v1971_v0 = vpop.f32.mrb[5].mxu1  ;;  %v2218_v35 = vsel %vm1082_vm5, %v2184_v56, 0.0 }
 0x166   :  { %v1087_v1 = vadd.f32 %v1086_v61, %v1085_v49  ;;  %v2216_v3 = vsel %vm1082_vm5, %v2183_v57, 0.0  ;;  %v1055_v5 = vmax.f32 %v1023_v58, 0.0  ;;  %v2153_v7 = vadd.f32 %v4195_v23, %v1971_v0 }
 0x167   :  { %v2217_v9 = vadd.f32 %v2216_v3, %v2215_v52  ;;  %v2186_v10 = vmax.f32 %v2154_v62, 0.0  ;;  %v1054_v11 = vmax.f32 %v1022_v63, 0.0  ;;  %v2982_v13 = vpop.f32.mrb[6].mxu0 }
 0x168   :  { %v1089_v37 = vadd.f32 %v1088_v8, %v1087_v1  ;;  %v2185_v38 = vmax.f32 %v2153_v7, 0.0  ;;  %v1025_v2 = vadd.f32 %v2982_v13, %v4195_v23  ;;  %v3138_v4 = vpop.f32.mrb[6].mxu1  ;;  %v850_v6 = vpop.f32.mrb[7].mxu0  ;;  %v1092_v17 = vsel %vm1082_vm5, %v1055_v5, 0.0 }
 0x169   :  { %v1090_v12 = vsel %vm1082_vm5, %v1054_v11, 0.0  ;;  %v2219_v14 = vadd.f32 %v2218_v35, %v2217_v9  ;;  %v2156_v15 = vadd.f32 %v3138_v4, %v4195_v23  ;;  %v1981_v16 = vpop.f32.mrb[7].mxu1  ;;  %v1024_v20 = vadd.f32 %v4195_v23, %v850_v6 }
 0x16a   :  { %v1091_v18 = vadd.f32 %v1090_v12, %v1089_v37  ;;  %v2220_v19 = vsel %vm1082_vm5, %v2185_v38, 0.0  ;;  %v2222_v21 = vsel %vm1082_vm5, %v2186_v10, 0.0  ;;  %v1057_v24 = vmax.f32 %v1025_v2, 0.0 }
 0x16b   :  { %v2221_v22 = vadd.f32 %v2220_v19, %v2219_v14  ;;  %v2155_v25 = vadd.f32 %v4195_v23, %v1981_v16  ;;  %v2985_v26 = vpop.f32.mrb[8].mxu0  ;;  %v2188_v27 = vmax.f32 %v2156_v15, 0.0  ;;  %v1056_v28 = vmax.f32 %v1024_v20, 0.0 }
 0x16c   :  { %v1093_v29 = vadd.f32 %v1092_v17, %v1091_v18  ;;  %v1027_v30 = vadd.f32 %v2985_v26, %v4195_v23  ;;  %v3141_v31 = vpop.f32.mrb[8].mxu1  ;;  %v860_v32 = vpop.f32.mrb[9].mxu0  ;;  %v1096_v43 = vsel %vm1082_vm5, %v1057_v24, 0.0 }
 0x16d   :  { %v2187_v33 = vmax.f32 %v2155_v25, 0.0  ;;  %v2223_v34 = vadd.f32 %v2222_v21, %v2221_v22  ;;  %v2158_v36 = vadd.f32 %v3141_v31, %v4195_v23  ;;  %v1991_v39 = vpop.f32.mrb[9].mxu1  ;;  %v1094_v40 = vsel %vm1082_vm5, %v1056_v28, 0.0 }
 0x16e   :  { %v1026_v41 = vadd.f32 %v4195_v23, %v860_v32  ;;  %v2157_v42 = vadd.f32 %v4195_v23, %v1991_v39  ;;  %v1095_v44 = vadd.f32 %v1094_v40, %v1093_v29  ;;  %v1059_v46 = vmax.f32 %v1027_v30, 0.0 }
 0x16f   :  { %v2224_v45 = vsel %vm1082_vm5, %v2187_v33, 0.0  ;;  %v2988_v47 = vpop.f32.mrb[10].mxu0  ;;  %v2226_v48 = vsel %vm1082_vm5, %v2188_v27, 0.0  ;;  %v2190_v54 = vmax.f32 %v2158_v36, 0.0 }
 0x170   :  { %v2225_v49 = vadd.f32 %v2224_v45, %v2223_v34  ;;  %v1058_v50 = vmax.f32 %v1026_v41, 0.0  ;;  %v2189_v51 = vmax.f32 %v2157_v42, 0.0  ;;  %v3144_v52 = vpop.f32.mrb[10].mxu1  ;;  %v870_v53 = vpop.f32.mrb[11].mxu0  ;;  %v1097_v55 = vadd.f32 %v1096_v43, %v1095_v44 }
 0x171   :  { %v1029_v56 = vadd.f32 %v2988_v47, %v4195_v23  ;;  %v2160_v57 = vadd.f32 %v3144_v52, %v4195_v23  ;;  %v2001_v58 = vpop.f32.mrb[11].mxu1  ;;  %v1028_v62 = vadd.f32 %v4195_v23, %v870_v53  ;;  %v1100_v63 = vsel %vm1082_vm5, %v1059_v46, 0.0 }
 0x172   :  { %v1098_v59 = vsel %vm1082_vm5, %v1058_v50, 0.0  ;;  %v2227_v60 = vadd.f32 %v2226_v48, %v2225_v49  ;;  %v2228_v61 = vsel %vm1082_vm5, %v2189_v51, 0.0  ;;  %v2159_v3 = vadd.f32 %v4195_v23, %v2001_v58 }
 0x173   :  { %v1099_v0 = vadd.f32 %v1098_v59, %v1097_v55  ;;  %v1061_v1 = vmax.f32 %v1029_v56, 0.0  ;;  %v2991_v5 = vpop.f32.mrb[12].mxu0  ;;  %v2192_v8 = vmax.f32 %v2160_v57, 0.0  ;;  %v1060_v9 = vmax.f32 %v1028_v62, 0.0 }
 0x174   :  { %v2229_v7 = vadd.f32 %v2228_v61, %v2227_v60  ;;  %v1031_v10 = vadd.f32 %v2991_v5, %v4195_v23  ;;  %v3147_v11 = vpop.f32.mrb[12].mxu1  ;;  %v880_v13 = vpop.f32.mrb[13].mxu0  ;;  %v2230_v35 = vsel %vm1082_vm5, %v2190_v54, 0.0  ;;  %v2191_v2 = vmax.f32 %v2159_v3, 0.0 }
 0x175   :  { %v1104_v37 = vsel %vm1082_vm5, %v1061_v1, 0.0  ;;  %v1101_v38 = vadd.f32 %v1100_v63, %v1099_v0  ;;  %v2011_v4 = vpop.f32.mrb[13].mxu1  ;;  %v1102_v6 = vsel %vm1082_vm5, %v1060_v9, 0.0  ;;  %v2162_v15 = vadd.f32 %v3147_v11, %v4195_v23 }
 0x176   :  { %v2231_v12 = vadd.f32 %v2230_v35, %v2229_v7  ;;  %v1063_v14 = vmax.f32 %v1031_v10, 0.0  ;;  %v2232_v17 = vsel %vm1082_vm5, %v2191_v2, 0.0  ;;  %v1030_v18 = vadd.f32 %v4195_v23, %v880_v13 }
 0x177   :  { %v1103_v16 = vadd.f32 %v1102_v6, %v1101_v38  ;;  %v2161_v19 = vadd.f32 %v4195_v23, %v2011_v4  ;;  %v2994_v20 = vpop.f32.mrb[14].mxu0  ;;  %v2234_v21 = vsel %vm1082_vm5, %v2192_v8, 0.0  ;;  %v2194_v24 = vmax.f32 %v2162_v15, 0.0 }
 0x178   :  { %v2233_v22 = vadd.f32 %v2232_v17, %v2231_v12  ;;  %v1033_v25 = vadd.f32 %v2994_v20, %v4195_v23  ;;  %v3150_v26 = vpop.f32.mrb[14].mxu1  ;;  %v890_v27 = vpop.f32.mrb[15].mxu0  ;;  %v1062_v28 = vmax.f32 %v1030_v18, 0.0  ;;  %v1108_v33 = vsel %vm1082_vm5, %v1063_v14, 0.0 }
 0x179   :  { %v1105_v29 = vadd.f32 %v1104_v37, %v1103_v16  ;;  %v2193_v30 = vmax.f32 %v2161_v19, 0.0  ;;  %v2164_v31 = vadd.f32 %v3150_v26, %v4195_v23  ;;  %v2021_v32 = vpop.f32.mrb[15].mxu1  ;;  %v1032_v36 = vadd.f32 %v4195_v23, %v890_v27 }
 0x17a   :  { %v2235_v34 = vadd.f32 %v2234_v21, %v2233_v22  ;;  %v1106_v39 = vsel %vm1082_vm5, %v1062_v28, 0.0  ;;  %v1065_v41 = vmax.f32 %v1033_v25, 0.0  ;;  %v2163_v42 = vadd.f32 %v4195_v23, %v2021_v32 }
 0x17b   :  { %v2236_v40 = vsel %vm1082_vm5, %v2193_v30, 0.0  ;;  %v2997_v43 = vpop.f32.mrb[16].mxu0  ;;  %v2238_v44 = vsel %vm1082_vm5, %v2194_v24, 0.0  ;;  %v1107_v45 = vadd.f32 %v1106_v39, %v1105_v29  ;;  %v1064_v47 = vmax.f32 %v1032_v36, 0.0 }
 0x17c   :  { %v2237_v46 = vadd.f32 %v2236_v40, %v2235_v34  ;;  %v3153_v48 = vpop.f32.mrb[16].mxu1  ;;  %v900_v49 = vpop.f32.mrb[17].mxu0  ;;  %v2196_v50 = vmax.f32 %v2164_v31, 0.0  ;;  %v2195_v51 = vmax.f32 %v2163_v42, 0.0  ;;  %v1035_v52 = vadd.f32 %v2997_v43, %v4195_v23 }
 0x17d   :  { %v2166_v53 = vadd.f32 %v3153_v48, %v4195_v23  ;;  %v2031_v54 = vpop.f32.mrb[17].mxu1  ;;  %v1109_v55 = vadd.f32 %v1108_v33, %v1107_v45  ;;  %v1110_v56 = vsel %vm1082_vm5, %v1064_v47, 0.0  ;;  %v1034_v58 = vadd.f32 %v4195_v23, %v900_v49 }
 0x17e   :  { %v2239_v57 = vadd.f32 %v2238_v44, %v2237_v46  ;;  %v1112_v59 = vsel %vm1082_vm5, %v1065_v41, 0.0  ;;  %v2240_v60 = vsel %vm1082_vm5, %v2195_v51, 0.0  ;;  %v1067_v61 = vmax.f32 %v1035_v52, 0.0 }
 0x17f   :  { %v2165_v62 = vadd.f32 %v4195_v23, %v2031_v54  ;;  %v3000_v63 = vpop.f32.mrb[18].mxu0  ;;  %v1111_v0 = vadd.f32 %v1110_v56, %v1109_v55  ;;  %v1066_v3 = vmax.f32 %v1034_v58, 0.0  ;;  %v2242_v9 = vsel %vm1082_vm5, %v2196_v50, 0.0 }
 0x180   :  { %v2241_v1 = vadd.f32 %v2240_v60, %v2239_v57  ;;  %v1037_v5 = vadd.f32 %v3000_v63, %v4195_v23  ;;  %v3156_v7 = vpop.f32.mrb[18].mxu1  ;;  %v910_v8 = vpop.f32.mrb[19].mxu0  ;;  %v2198_v10 = vmax.f32 %v2166_v53, 0.0  ;;  %v1116_v6 = vsel %vm1082_vm5, %v1067_v61, 0.0 }
 0x181   :  { %v2197_v11 = vmax.f32 %v2165_v62, 0.0  ;;  %v2168_v13 = vadd.f32 %v3156_v7, %v4195_v23  ;;  %v2041_v35 = vpop.f32.mrb[19].mxu1  ;;  %v1113_v37 = vadd.f32 %v1112_v59, %v1111_v0  ;;  %v1114_v38 = vsel %vm1082_vm5, %v1066_v3, 0.0 }
 0x182   :  { %v2243_v2 = vadd.f32 %v2242_v9, %v2241_v1  ;;  %v1069_v4 = vmax.f32 %v1037_v5, 0.0  ;;  %v1036_v14 = vadd.f32 %v4195_v23, %v910_v8  ;;  %v2167_v15 = vadd.f32 %v4195_v23, %v2041_v35 }
 0x183   :  { %v2244_v12 = vsel %vm1082_vm5, %v2197_v11, 0.0  ;;  %v3003_v16 = vpop.f32.mrb[20].mxu0  ;;  %v1115_v17 = vadd.f32 %v1114_v38, %v1113_v37  ;;  %v2200_v19 = vmax.f32 %v2168_v13, 0.0  ;;  %v2246_v24 = vsel %vm1082_vm5, %v2198_v10, 0.0 }
 0x184   :  { %v2245_v18 = vadd.f32 %v2244_v12, %v2243_v2  ;;  %v1039_v20 = vadd.f32 %v3003_v16, %v4195_v23  ;;  %v3159_v21 = vpop.f32.mrb[20].mxu1  ;;  %v920_v22 = vpop.f32.mrb[21].mxu0  ;;  %v1068_v25 = vmax.f32 %v1036_v14, 0.0  ;;  %v2199_v26 = vmax.f32 %v2167_v15, 0.0 }
 0x185   :  { %v2170_v27 = vadd.f32 %v3159_v21, %v4195_v23  ;;  %v2051_v28 = vpop.f32.mrb[21].mxu1  ;;  %v1120_v29 = vsel %vm1082_vm5, %v1069_v4, 0.0  ;;  %v1117_v30 = vadd.f32 %v1116_v6, %v1115_v17  ;;  %v1038_v32 = vadd.f32 %v4195_v23, %v920_v22 }
 0x186   :  { %v2247_v31 = vadd.f32 %v2246_v24, %v2245_v18  ;;  %v1118_v33 = vsel %vm1082_vm5, %v1068_v25, 0.0  ;;  %v2248_v34 = vsel %vm1082_vm5, %v2199_v26, 0.0  ;;  %v1071_v36 = vmax.f32 %v1039_v20, 0.0 }
 0x187   :  { %v2169_v39 = vadd.f32 %v4195_v23, %v2051_v28  ;;  %v3006_v40 = vpop.f32.mrb[22].mxu0  ;;  %v2250_v41 = vsel %vm1082_vm5, %v2200_v19, 0.0  ;;  %v1119_v42 = vadd.f32 %v1118_v33, %v1117_v30  ;;  %v1070_v44 = vmax.f32 %v1038_v32, 0.0 }
 0x188   :  { %v2249_v43 = vadd.f32 %v2248_v34, %v2247_v31  ;;  %v3162_v45 = vpop.f32.mrb[22].mxu1  ;;  %v930_v46 = vpop.f32.mrb[23].mxu0  ;;  %v2202_v47 = vmax.f32 %v2170_v27, 0.0  ;;  %v1041_v49 = vadd.f32 %v3006_v40, %v4195_v23  ;;  %v1124_v56 = vsel %vm1082_vm5, %v1071_v36, 0.0 }
 0x189   :  { %v2201_v48 = vmax.f32 %v2169_v39, 0.0  ;;  %v2172_v50 = vadd.f32 %v3162_v45, %v4195_v23  ;;  %v2061_v51 = vpop.f32.mrb[23].mxu1  ;;  %v1121_v52 = vadd.f32 %v1120_v29, %v1119_v42  ;;  %v1122_v53 = vsel %vm1082_vm5, %v1070_v44, 0.0 }
 0x18a   :  { %v2251_v54 = vadd.f32 %v2250_v41, %v2249_v43  ;;  %v1040_v55 = vadd.f32 %v4195_v23, %v930_v46  ;;  %v1073_v58 = vmax.f32 %v1041_v49, 0.0  ;;  %v2171_v59 = vadd.f32 %v4195_v23, %v2061_v51 }
 0x18b   :  { %v2252_v57 = vsel %vm1082_vm5, %v2201_v48, 0.0  ;;  %v3009_v60 = vpop.f32.mrb[24].mxu0  ;;  %v1123_v61 = vadd.f32 %v1122_v53, %v1121_v52  ;;  %v2254_v5 = vsel %vm1082_vm5, %v2202_v47, 0.0  ;;  %v2204_v7 = vmax.f32 %v2172_v50, 0.0 }
 0x18c   :  { %v2253_v62 = vadd.f32 %v2252_v57, %v2251_v54  ;;  %v1072_v63 = vmax.f32 %v1040_v55, 0.0  ;;  %v1043_v0 = vadd.f32 %v3009_v60, %v4195_v23  ;;  %v3165_v1 = vpop.f32.mrb[24].mxu1  ;;  %v940_v3 = vpop.f32.mrb[25].mxu0  ;;  %v2203_v8 = vmax.f32 %v2171_v59, 0.0 }
 0x18d   :  { %v2174_v9 = vadd.f32 %v3165_v1, %v4195_v23  ;;  %v2071_v10 = vpop.f32.mrb[25].mxu1  ;;  %v1125_v11 = vadd.f32 %v1124_v56, %v1123_v61  ;;  %v1128_v38 = vsel %vm1082_vm5, %v1073_v58, 0.0  ;;  %v1042_v4 = vadd.f32 %v4195_v23, %v940_v3 }
 0x18e   :  { %v1126_v13 = vsel %vm1082_vm5, %v1072_v63, 0.0  ;;  %v2255_v35 = vadd.f32 %v2254_v5, %v2253_v62  ;;  %v1075_v37 = vmax.f32 %v1043_v0, 0.0  ;;  %v2256_v2 = vsel %vm1082_vm5, %v2203_v8, 0.0 }
 0x18f   :  { %v2173_v6 = vadd.f32 %v4195_v23, %v2071_v10  ;;  %v3012_v12 = vpop.f32.mrb[26].mxu0  ;;  %v1127_v14 = vadd.f32 %v1126_v13, %v1125_v11  ;;  %v2206_v16 = vmax.f32 %v2174_v9, 0.0  ;;  %v2258_v20 = vsel %vm1082_vm5, %v2204_v7, 0.0 }
 0x190   :  { %v2257_v15 = vadd.f32 %v2256_v2, %v2255_v35  ;;  %v1045_v17 = vadd.f32 %v3012_v12, %v4195_v23  ;;  %v3168_v18 = vpop.f32.mrb[26].mxu1  ;;  %v950_v19 = vpop.f32.mrb[27].mxu0  ;;  %v1074_v21 = vmax.f32 %v1042_v4, 0.0  ;;  %v1132_v26 = vsel %vm1082_vm5, %v1075_v37, 0.0 }
 0x191   :  { %v2205_v22 = vmax.f32 %v2173_v6, 0.0  ;;  %v2176_v24 = vadd.f32 %v3168_v18, %v4195_v23  ;;  %v2081_v25 = vpop.f32.mrb[27].mxu1  ;;  %v1129_v27 = vadd.f32 %v1128_v38, %v1127_v14  ;;  %v1044_v29 = vadd.f32 %v4195_v23, %v950_v19 }
 0x192   :  { %v2259_v28 = vadd.f32 %v2258_v20, %v2257_v15  ;;  %v1130_v30 = vsel %vm1082_vm5, %v1074_v21, 0.0  ;;  %v1077_v32 = vmax.f32 %v1045_v17, 0.0  ;;  %v2175_v33 = vadd.f32 %v4195_v23, %v2081_v25 }
 0x193   :  { %v2260_v31 = vsel %vm1082_vm5, %v2205_v22, 0.0  ;;  %v3015_v34 = vpop.f32.mrb[28].mxu0  ;;  %v2262_v36 = vsel %vm1082_vm5, %v2206_v16, 0.0  ;;  %v1131_v39 = vadd.f32 %v1130_v30, %v1129_v27  ;;  %v1076_v41 = vmax.f32 %v1044_v29, 0.0 }
 0x194   :  { %v2261_v40 = vadd.f32 %v2260_v31, %v2259_v28  ;;  %v3171_v42 = vpop.f32.mrb[28].mxu1  ;;  %v960_v43 = vpop.f32.mrb[29].mxu0  ;;  %v2208_v44 = vmax.f32 %v2176_v24, 0.0  ;;  %v2207_v45 = vmax.f32 %v2175_v33, 0.0  ;;  %v1047_v46 = vadd.f32 %v3015_v34, %v4195_v23 }
 0x195   :  { %v2178_v47 = vadd.f32 %v3171_v42, %v4195_v23  ;;  %v2091_v48 = vpop.f32.mrb[29].mxu1  ;;  %v1133_v49 = vadd.f32 %v1132_v26, %v1131_v39  ;;  %v1134_v50 = vsel %vm1082_vm5, %v1076_v41, 0.0  ;;  %v1046_v52 = vadd.f32 %v4195_v23, %v960_v43 }
 0x196   :  { %v2263_v51 = vadd.f32 %v2262_v36, %v2261_v40  ;;  %v1136_v53 = vsel %vm1082_vm5, %v1077_v32, 0.0  ;;  %v2264_v54 = vsel %vm1082_vm5, %v2207_v45, 0.0  ;;  %v1079_v55 = vmax.f32 %v1047_v46, 0.0 }
 0x197   :  { %v2177_v56 = vadd.f32 %v4195_v23, %v2091_v48  ;;  %v3018_v57 = vpop.f32.mrb[30].mxu0  ;;  %v1135_v58 = vadd.f32 %v1134_v50, %v1133_v49  ;;  %v2210_v60 = vmax.f32 %v2178_v47, 0.0  ;;  %v1078_v61 = vmax.f32 %v1046_v52, 0.0 }
 0x198   :  { %v2265_v59 = vadd.f32 %v2264_v54, %v2263_v51  ;;  %v3174_v62 = vpop.f32.mrb[30].mxu1  ;;  %v970_v63 = vpop.f32.mrb[31].mxu0  ;;  %v2266_v0 = vsel %vm1082_vm5, %v2208_v44, 0.0  ;;  %v1049_v3 = vadd.f32 %v3018_v57, %v4195_v23  ;;  %v1140_v37 = vsel %vm1082_vm5, %v1079_v55, 0.0  ;;  %v2655_v44 = vld [vmem:[%s4345_s4] ss:$0 sm:$0xff] }
 0x199   :  { %v2209_v1 = vmax.f32 %v2177_v56, 0.0  ;;  %v2180_v5 = vadd.f32 %v3174_v62, %v4195_v23  ;;  %v2101_v7 = vpop.f32.mrb[31].mxu1  ;;  %v1137_v8 = vadd.f32 %v1136_v53, %v1135_v58  ;;  %v1138_v9 = vsel %vm1082_vm5, %v1078_v61, 0.0 }
 0x19a   :  { %v2267_v10 = vadd.f32 %v2266_v0, %v2265_v59  ;;  %v1048_v13 = vadd.f32 %v4195_v23, %v970_v63  ;;  %v2179_v35 = vadd.f32 %v4195_v23, %v2101_v7  ;;  %v2270_v38 = vsel %vm1082_vm5, %v2210_v60, 0.0 }
 0x19b   :  { %v2268_v11 = vsel %vm1082_vm5, %v2209_v1, 0.0  ;;  %v1139_v2 = vadd.f32 %v1138_v9, %v1137_v8  ;;  %v1081_v6 = vmax.f32 %v1049_v3, 0.0  ;;  %v2212_v12 = vmax.f32 %v2180_v5, 0.0 }
 0x19c   :  { %v2269_v4 = vadd.f32 %v2268_v11, %v2267_v10  ;;  %v1080_v14 = vmax.f32 %v1048_v13, 0.0  ;;  %v2211_v15 = vmax.f32 %v2179_v35, 0.0 }
 0x19d   :  { %v1141_v16 = vadd.f32 %v1140_v37, %v1139_v2  ;;  %v1144_v23 = vsel %vm1082_vm5, %v1081_v6, 0.0  ;;  %v2274_v22 = vsel %vm1082_vm5, %v2212_v12, 0.0 }
 0x19e   :  { %v2271_v17 = vadd.f32 %v2270_v38, %v2269_v4  ;;  %v1142_v18 = vsel %vm1082_vm5, %v1080_v14, 0.0  ;;  %v2272_v19 = vsel %vm1082_vm5, %v2211_v15, 0.0 }
 0x19f   :  { %v1143_v20 = vadd.f32 %v1142_v18, %v1141_v16 }
 0x1a0   :  { %v2273_v21 = vadd.f32 %v2272_v19, %v2271_v17 }
 0x1a1   :  { %v1145_v24 = vadd.f32 %v1144_v23, %v1143_v20 }
 0x1a2   :  { %v2275_v25 = vadd.f32 %v2274_v22, %v2273_v21 }
 0x1a3   :  { %v1146_v26 = vrot.slane %v1145_v24, 4 }
 0x1a4   :  { %v2276_v27 = vrot.slane %v2275_v25, 4 }
 0x1a5   :  { %v1147_v28 = vadd.f32 %v1146_v26, %v1145_v24 }
 0x1a6   :  { %v2277_v29 = vadd.f32 %v2276_v27, %v2275_v25 }
 0x1a7   :  { %v1148_v30 = vrot.slane %v1147_v28, 2 }
 0x1a8   :  { %v2278_v31 = vrot.slane %v2277_v29, 2 }
 0x1a9   :  { %v1149_v32 = vadd.f32 %v1148_v30, %v1147_v28 }
 0x1aa   :  { %v2279_v33 = vadd.f32 %v2278_v31, %v2277_v29 }
 0x1ab   :  { %v1150_v34 = vrot.slane %v1149_v32, 1 }
 0x1ac   :  { %v2280_v36 = vrot.slane %v2279_v33, 1 }
 0x1ad   :  { %v1151_v39 = vadd.f32 %v1150_v34, %v1149_v32 }
 0x1ae   :  { %v2281_v40 = vadd.f32 %v2280_v36, %v2279_v33 }
 0x1af   :  { %v1152_v41 = vmul.f32 0.00390625, %v1151_v39 }
 0x1b0   :  { %v2282_v42 = vmul.f32 0.00390625, %v2281_v40 }
 0x1b1   :  { %1154 = vst.msk [vmem:[#allocation2] sm:$0x1] %vm1153_vm6, %v1152_v41 }
 0x1b2   :  { %2283 = vst.msk [vmem:[#allocation2 + $0x1] sm:$0x1] %vm1153_vm6, %v2282_v42 }
 0x1b9   :  { %v2284_v43 = vld [vmem:[#allocation2] sm:$0x3] }
 0x1ba   :  { %3178 = vmatmul.mubr.msk.f32.vlgmr.msra.gmra.mrb[32].mxu0 %vm1082_vm5, %v2284_v43 }
 0x28d   :  { %v2362_v45 = vpop.f32.mrb[32].mxu0 }
 0x28e   :  { %v2363_v46 = vadd.f32 %v2655_v44, %v2362_v45  ;;  %v3179_v47 = vpop.f32.mrb[33].mxu0 }
 0x290   :  { %2366 = vst [vmem:[#allocation3] sm:$0x3] %v2363_v46 }
 0x291   :  { %3359 = shalt.err (!%p3356_p4)
}
 0x292   :  { %s3360_s9 = scalar_lea.hbm %s4346_s5, 32 }
 0x293   :  { %p3361_p5 = scmp.ne.s32.totalorder %s4346_s5, %s3360_s9  ;;  %p3364_p6 = scmp.lt.u32.totalorder %s3360_s9, %s4346_s5 }
 0x295   :  { %p3366_p7 = pnand %p3364_p6, %p3361_p5 }
 0x297   :  { %3369 = shalt.err (!%p3366_p7)
}
 0x298   :  { %2376 = dma.vmem_to_hbm [thread:$0]  %s2374_s30, 32, %s4346_s5, [#allocation4]  }
 0x299   :  { %3370 = dma.done.wait [#allocation4], 32  }
 0x29a   :  { %3371 = vsyncadd [#allocation4], 4294967264 }
 0x29b   :  { %2380 = vsyncpa [#allocation4], 1 }

</bundles_post_ra>
